<compile_context>
chip_gen: v6e
topology: v6e:2x2x1
jax: 0.10.0
libtpu: 0.0.40
codegen_flags: <defaults>
</compile_context>

<pallas_src>
import numpy as np
import jax
import jax.numpy as jnp
from jax.experimental import pallas as pl
from jax.experimental.pallas import tpu as pltpu

D_IN = 3
NUM_FREQ = 3
D_EMB = D_IN * (1 + 2 * NUM_FREQ)          # 21
D_PACK = D_EMB + 1                         # 22 = emb + ones row (bias fold)
D_HIDDEN = 64
D_OUT = 3
SKIP_OUT = D_HIDDEN - D_EMB                # 43
FREQ_BANDS = tuple(float(2.0 ** f) for f in np.linspace(0.0, NUM_FREQ - 1, NUM_FREQ))  # (1., 2., 4.)
INV_SQRT2 = float(1.0 / np.sqrt(2.0))
LEAKY_SLOPE = 0.01
HALF_PI = float(np.pi / 2.0)


def samp_kernel(z_ref, w0p_ref, w1_ref, b1_ref, w2x_ref, w2e_ref, o_ref, slab_ref):
    # z_ref: (3, T) tile — features on sublanes, points on lanes (scale == 1).
    z = z_ref[...]
    t = z.shape[1]

    # ---- positional encoding: ONE transcendental pass + double-angle ----
    # sin([z, z + pi/2]) -> rows 0:3 = sin(z), rows 3:6 = cos(z); a single
    # 6-sublane slab instead of separate sin/cos polynomials per band.
    sincos = jnp.sin(jnp.concatenate([z, z + HALF_PI], axis=0))      # (6, T)

    # ---- packed (22, T) embedding slab in VMEM scratch ----
    # rows: [z(0:3), sin z(3:6), cos z(6:9), sin 2z(9:12), cos 2z(12:15),
    #        sin 4z(15:18), cos 4z(18:21), ones(21)]  (matches emb column order).
    slab_ref[pl.ds(0, 3), :] = z
    slab_ref[pl.ds(3, 6), :] = sincos
    s1 = slab_ref[pl.ds(3, 3), :]
    c1 = slab_ref[pl.ds(6, 3), :]
    s2 = 2.0 * s1 * c1                               # sin(2z)
    c2 = 1.0 - 2.0 * s1 * s1                         # cos(2z)
    slab_ref[pl.ds(9, 3), :] = s2
    slab_ref[pl.ds(12, 3), :] = c2
    slab_ref[pl.ds(15, 3), :] = 2.0 * s2 * c2        # sin(4z)
    slab_ref[pl.ds(18, 3), :] = 1.0 - 2.0 * s2 * s2  # cos(4z)
    # constant row written every step (scratch is per-core; do not rely on step 0).
    slab_ref[pl.ds(D_EMB, 1), :] = jnp.ones((1, t), jnp.float32)
    slab = slab_ref[...]                              # (22, T)

    # ---- lin0: single packed matmul, b0 folded into the ones column ----
    h = jnp.dot(w0p_ref[...], slab, preferred_element_type=jnp.float32)
    h = jnp.maximum(h, LEAKY_SLOPE * h)               # LeakyReLU(0.01) as max

    # ---- lin1: 64 -> 43 ----
    h = jnp.dot(w1_ref[...], h, preferred_element_type=jnp.float32) + b1_ref[...]
    h = jnp.maximum(h, LEAKY_SLOPE * h)

    # ---- lin2 on concat([x, emb]) / sqrt(2): hidden part + packed emb part,
    #      1/sqrt(2) folded into the weights and b2 folded into the ones column ----
    o = (jnp.dot(w2x_ref[...], h, preferred_element_type=jnp.float32)
         + jnp.dot(w2e_ref[...], slab, preferred_element_type=jnp.float32))

    # ---- cosine head: (cos(x) + 1) / 2 — lane-dense (3, T) store ----
    o_ref[...] = ((jnp.cos(o) + 1.0) * 0.5).astype(o_ref.dtype)


def _prepare_params(params):
    """Host-side re-layout of the (in, out)-stored params into the transposed,
    packed, 1/sqrt(2)-folded form the kernel consumes (5 arrays total)."""
    w0, b0, w1, b1, w2, b2 = params
    w0t = jnp.asarray(w0).T.astype(jnp.float32)       # (64, 21)
    w1t = jnp.asarray(w1).T.astype(jnp.float32)       # (43, 64)
    w2t = jnp.asarray(w2).T.astype(jnp.float32)       # (3, 64)
    b0c = jnp.asarray(b0).reshape(D_HIDDEN, 1).astype(jnp.float32)
    b1c = jnp.asarray(b1).reshape(SKIP_OUT, 1).astype(jnp.float32)
    b2c = jnp.asarray(b2).reshape(D_OUT, 1).astype(jnp.float32)

    # lin0 packed: [w0^T | b0]  acting on [emb ; ones]
    w0p = jnp.concatenate([w0t, b0c], axis=1)                     # (64, 22)
    # lin2 split: hidden part (scaled by 1/sqrt(2)), packed emb part [w2e/sqrt2 | b2]
    w2x = w2t[:, :SKIP_OUT] * INV_SQRT2                           # (3, 43)
    w2e = jnp.concatenate([w2t[:, SKIP_OUT:] * INV_SQRT2, b2c], axis=1)  # (3, 22)
    return (w0p, w1t, b1c, w2x, w2e)


def _default_tile(n):
    # Big lane tiles amortize the ~0.35us per-grid-step cost; halve until the
    # grid keeps >= 2 steps (v7x has two TensorCores sharing the "parallel"
    # axis), with a 128-lane floor.
    t = 16384 if n > (1 << 22) else 8192
    while t > 128 and n <= t:
        t //= 2
    return t


def samp_forward_t(z_t, params, *, tile_n=None):
    """Transposed-layout entry point: z_t is (3, N), returns (3, N).
    No wrapper-side transposes — prefer this when the producer/consumer can
    keep data in (3, N) layout."""
    d, n = z_t.shape
    assert d == D_IN, f"expected leading dim {D_IN}, got {d}"
    if tile_n is None:
        tile_n = _default_tile(n)
    n_pad = pl.cdiv(n, tile_n) * tile_n
    z_t = z_t.astype(jnp.float32)
    if n_pad != n:
        z_t = jnp.pad(z_t, ((0, 0), (0, n_pad - n)))

    prepped = _prepare_params(params)

    def full_spec(arr):
        # weights / biases: block == full array, constant index map -> stays resident
        return pl.BlockSpec(arr.shape, lambda i: (0, 0))

    out_t = pl.pallas_call(
        samp_kernel,
        out_shape=jax.ShapeDtypeStruct((D_OUT, n_pad), jnp.float32),
        grid=(n_pad // tile_n,),
        in_specs=[pl.BlockSpec((D_IN, tile_n), lambda i: (0, i))]
                 + [full_spec(p) for p in prepped],
        out_specs=pl.BlockSpec((D_OUT, tile_n), lambda i: (0, i)),
        scratch_shapes=[pltpu.VMEM((D_PACK, tile_n), jnp.float32)],
        compiler_params=pltpu.CompilerParams(
            dimension_semantics=("parallel",),
            vmem_limit_bytes=32 * 1024 * 1024),
    )(z_t, *prepped)

    if n_pad != n:
        out_t = out_t[:, :n]
    return out_t


def samp_forward(z, params, *, tile_n=None):
    """Drop-in (N, 3) -> (N, 3) interface matching the PyTorch module.
    The two wrapper transposes are extra HBM round trips at large N; use
    samp_forward_t to avoid them when layout is negotiable."""
    n, d = z.shape
    assert d == D_IN, f"expected last dim {D_IN}, got {d}"
    return samp_forward_t(z.T, params, tile_n=tile_n).T


def init_params(key):
    """Deterministic synthetic init mirroring the PyTorch shapes:
    orthogonal weights (stored transposed as (in, out)), normal biases."""
    ortho = jax.nn.initializers.orthogonal()
    k = jax.random.split(key, 6)
    w0 = ortho(k[0], (D_HIDDEN, D_EMB), jnp.float32).T      # (21, 64)
    b0 = jax.random.normal(k[1], (1, D_HIDDEN), jnp.float32)
    w1 = ortho(k[2], (SKIP_OUT, D_HIDDEN), jnp.float32).T   # (64, 43)
    b1 = jax.random.normal(k[3], (1, SKIP_OUT), jnp.float32)
    w2 = ortho(k[4], (D_OUT, D_HIDDEN), jnp.float32).T      # (64, 3)
    b2 = jax.random.normal(k[5], (1, D_OUT), jnp.float32)
    return (w0, b0, w1, b1, w2, b2)


def samp_reference(z, params):
    """Pure-JAX reference of the PyTorch forward pass."""
    w0, b0, w1, b1, w2, b2 = params
    parts = [z]
    for f in FREQ_BANDS:
        parts.append(jnp.sin(z * f))
        parts.append(jnp.cos(z * f))
    emb = jnp.concatenate(parts, axis=-1)
    x = emb @ w0 + b0
    x = jnp.where(x >= 0, x, LEAKY_SLOPE * x)
    x = x @ w1 + b1
    x = jnp.where(x >= 0, x, LEAKY_SLOPE * x)
    h = jnp.concatenate([x, emb], axis=-1) * INV_SQRT2
    x = h @ w2 + b2
    return (jnp.cos(x) + 1.0) / 2.0


# TODO(synk): SDFNetwork.gradient (autograd-based normal computation) is not part of
# the forward pass and is left to jax.grad over samp_reference / samp_forward.

if __name__ == "__main__":
    key = jax.random.PRNGKey(0)
    k_z, k_p = jax.random.split(key)

    N = 512  # 2 lane tiles of 256 -> exercises the parallel grid axis
    z = jax.random.normal(k_z, (N, D_IN), dtype=jnp.float32)
    params = init_params(k_p)

    out = samp_forward(z, params)
    out = jax.block_until_ready(out)

    ref = samp_reference(z, params)
    # double-angle recurrences add ~1e-6 absolute error vs. direct sin/cos
    np.testing.assert_allclose(np.asarray(out), np.asarray(ref), rtol=2e-5, atol=2e-5)
    assert out.shape == (N, D_OUT)

    print("KERNEL_OK")
</pallas_src>

<mosaic_0001>
module attributes {stable_mosaic.version = 11 : i64} {
  func.func @samp_kernel(%arg0: i32, %arg1: memref<3x256xf32, #tpu.memory_space<vmem>>, %arg2: memref<64x22xf32, #tpu.memory_space<vmem>>, %arg3: memref<43x64xf32, #tpu.memory_space<vmem>>, %arg4: memref<43x1xf32, #tpu.memory_space<vmem>>, %arg5: memref<3x43xf32, #tpu.memory_space<vmem>>, %arg6: memref<3x22xf32, #tpu.memory_space<vmem>>, %arg7: memref<3x256xf32, #tpu.memory_space<vmem>>, %arg8: memref<22x256xf32, #tpu.memory_space<vmem>>) attributes {dimension_semantics = [#tpu.dimension_semantics<parallel>], iteration_bounds = array<i64: 2>, scalar_prefetch = 0 : i64, scratch_operands = 1 : i64, tpu.core_type = #tpu.core_type<tc>, window_params = [{transform_indices = @transform_0, window_bounds = array<i64: 3, 256>}, {pipeline_mode = #tpu.pipeline_mode<synchronous>, transform_indices = @transform_1, window_bounds = array<i64: 64, 22>}, {pipeline_mode = #tpu.pipeline_mode<synchronous>, transform_indices = @transform_2, window_bounds = array<i64: 43, 64>}, {pipeline_mode = #tpu.pipeline_mode<synchronous>, transform_indices = @transform_3, window_bounds = array<i64: 43, 1>}, {pipeline_mode = #tpu.pipeline_mode<synchronous>, transform_indices = @transform_4, window_bounds = array<i64: 3, 43>}, {pipeline_mode = #tpu.pipeline_mode<synchronous>, transform_indices = @transform_5, window_bounds = array<i64: 3, 22>}, {transform_indices = @transform_6, window_bounds = array<i64: 3, 256>}]} {
    %c0 = arith.constant 0 : index
    %c0_0 = arith.constant 0 : index
    %0 = vector.load %arg1[%c0, %c0_0] : memref<3x256xf32, #tpu.memory_space<vmem>>, vector<3x256xf32>
    %cst = arith.constant 1.57079637 : f32
    %1 = vector.broadcast %cst : f32 to vector<3x256xf32>
    %2 = arith.addf %0, %1 : vector<3x256xf32>
    %3 = tpu.concatenate %0, %2 in 0 : vector<3x256xf32>, vector<3x256xf32> -> vector<6x256xf32>
    %4 = math.sin %3 : vector<6x256xf32>
    %c0_1 = arith.constant 0 : index
    %c0_2 = arith.constant 0 : index
    %5 = vector.load %arg8[%c0_1, %c0_2] : memref<22x256xf32, #tpu.memory_space<vmem>>, vector<3x256xf32>
    tpu.vector_store %arg8[%c0_1, %c0_2], %0 {strides = array<i32>} : memref<22x256xf32, #tpu.memory_space<vmem>>, vector<3x256xf32>,
    %c3 = arith.constant 3 : index
    %c0_3 = arith.constant 0 : index
    %6 = vector.load %arg8[%c3, %c0_3] : memref<22x256xf32, #tpu.memory_space<vmem>>, vector<6x256xf32>
    tpu.vector_store %arg8[%c3, %c0_3], %4 {strides = array<i32>} : memref<22x256xf32, #tpu.memory_space<vmem>>, vector<6x256xf32>,
    %c3_4 = arith.constant 3 : index
    %c0_5 = arith.constant 0 : index
    %7 = vector.load %arg8[%c3_4, %c0_5] : memref<22x256xf32, #tpu.memory_space<vmem>>, vector<3x256xf32>
    %c6 = arith.constant 6 : index
    %c0_6 = arith.constant 0 : index
    %8 = vector.load %arg8[%c6, %c0_6] : memref<22x256xf32, #tpu.memory_space<vmem>>, vector<3x256xf32>
    %cst_7 = arith.constant 2.000000e+00 : f32
    %9 = vector.broadcast %cst_7 : f32 to vector<3x256xf32>
    %10 = arith.mulf %9, %7 : vector<3x256xf32>
    %11 = arith.mulf %10, %8 : vector<3x256xf32>
    %cst_8 = arith.constant 2.000000e+00 : f32
    %12 = vector.broadcast %cst_8 : f32 to vector<3x256xf32>
    %13 = arith.mulf %12, %7 : vector<3x256xf32>
    %14 = arith.mulf %13, %7 : vector<3x256xf32>
    %cst_9 = arith.constant 1.000000e+00 : f32
    %15 = vector.broadcast %cst_9 : f32 to vector<3x256xf32>
    %16 = arith.subf %15, %14 : vector<3x256xf32>
    %c9 = arith.constant 9 : index
    %c0_10 = arith.constant 0 : index
    %17 = vector.load %arg8[%c9, %c0_10] : memref<22x256xf32, #tpu.memory_space<vmem>>, vector<3x256xf32>
    tpu.vector_store %arg8[%c9, %c0_10], %11 {strides = array<i32>} : memref<22x256xf32, #tpu.memory_space<vmem>>, vector<3x256xf32>,
    %c12 = arith.constant 12 : index
    %c0_11 = arith.constant 0 : index
    %18 = vector.load %arg8[%c12, %c0_11] : memref<22x256xf32, #tpu.memory_space<vmem>>, vector<3x256xf32>
    tpu.vector_store %arg8[%c12, %c0_11], %16 {strides = array<i32>} : memref<22x256xf32, #tpu.memory_space<vmem>>, vector<3x256xf32>,
    %cst_12 = arith.constant 2.000000e+00 : f32
    %19 = vector.broadcast %cst_12 : f32 to vector<3x256xf32>
    %20 = arith.mulf %19, %11 : vector<3x256xf32>
    %21 = arith.mulf %20, %16 : vector<3x256xf32>
    %c15 = arith.constant 15 : index
    %c0_13 = arith.constant 0 : index
    %22 = vector.load %arg8[%c15, %c0_13] : memref<22x256xf32, #tpu.memory_space<vmem>>, vector<3x256xf32>
    tpu.vector_store %arg8[%c15, %c0_13], %21 {strides = array<i32>} : memref<22x256xf32, #tpu.memory_space<vmem>>, vector<3x256xf32>,
    %cst_14 = arith.constant 2.000000e+00 : f32
    %23 = vector.broadcast %cst_14 : f32 to vector<3x256xf32>
    %24 = arith.mulf %23, %11 : vector<3x256xf32>
    %25 = arith.mulf %24, %11 : vector<3x256xf32>
    %cst_15 = arith.constant 1.000000e+00 : f32
    %26 = vector.broadcast %cst_15 : f32 to vector<3x256xf32>
    %27 = arith.subf %26, %25 : vector<3x256xf32>
    %c18 = arith.constant 18 : index
    %c0_16 = arith.constant 0 : index
    %28 = vector.load %arg8[%c18, %c0_16] : memref<22x256xf32, #tpu.memory_space<vmem>>, vector<3x256xf32>
    tpu.vector_store %arg8[%c18, %c0_16], %27 {strides = array<i32>} : memref<22x256xf32, #tpu.memory_space<vmem>>, vector<3x256xf32>,
    %cst_17 = arith.constant 1.000000e+00 : f32
    %29 = vector.broadcast %cst_17 : f32 to vector<1x256xf32>
    %c21 = arith.constant 21 : index
    %c0_18 = arith.constant 0 : index
    %30 = vector.load %arg8[%c21, %c0_18] : memref<22x256xf32, #tpu.memory_space<vmem>>, vector<1x256xf32>
    tpu.vector_store %arg8[%c21, %c0_18], %29 {strides = array<i32>} : memref<22x256xf32, #tpu.memory_space<vmem>>, vector<1x256xf32>,
    %c0_19 = arith.constant 0 : index
    %c0_20 = arith.constant 0 : index
    %31 = vector.load %arg8[%c0_19, %c0_20] : memref<22x256xf32, #tpu.memory_space<vmem>>, vector<22x256xf32>
    %c0_21 = arith.constant 0 : index
    %c0_22 = arith.constant 0 : index
    %32 = vector.load %arg2[%c0_21, %c0_22] : memref<64x22xf32, #tpu.memory_space<vmem>>, vector<64x22xf32>
    %cst_23 = arith.constant dense<0.000000e+00> : vector<64x256xf32>
    %33 = tpu.matmul %32, %31, %cst_23 {dimension_numbers = #tpu.dot_dimension_numbers<[1], [0], [0], [1], [0, 0, 1, 1], [], []>} : vector<64x22xf32>, vector<22x256xf32>, vector<64x256xf32> -> vector<64x256xf32>
    %cst_24 = arith.constant 0.00999999977 : f32
    %34 = vector.broadcast %cst_24 : f32 to vector<64x256xf32>
    %35 = arith.mulf %34, %33 : vector<64x256xf32>
    %36 = arith.maximumf %33, %35 : vector<64x256xf32>
    %c0_25 = arith.constant 0 : index
    %c0_26 = arith.constant 0 : index
    %37 = vector.load %arg3[%c0_25, %c0_26] : memref<43x64xf32, #tpu.memory_space<vmem>>, vector<43x64xf32>
    %cst_27 = arith.constant dense<0.000000e+00> : vector<43x256xf32>
    %38 = tpu.matmul %37, %36, %cst_27 {dimension_numbers = #tpu.dot_dimension_numbers<[1], [0], [0], [1], [0, 0, 1, 1], [], []>} : vector<43x64xf32>, vector<64x256xf32>, vector<43x256xf32> -> vector<43x256xf32>
    %c0_28 = arith.constant 0 : index
    %c0_29 = arith.constant 0 : index
    %39 = vector.load %arg4[%c0_28, %c0_29] : memref<43x1xf32, #tpu.memory_space<vmem>>, vector<43x1xf32>
    %40 = vector.broadcast %39 : vector<43x1xf32> to vector<43x256xf32>
    %41 = arith.addf %38, %40 : vector<43x256xf32>
    %cst_30 = arith.constant 0.00999999977 : f32
    %42 = vector.broadcast %cst_30 : f32 to vector<43x256xf32>
    %43 = arith.mulf %42, %41 : vector<43x256xf32>
    %44 = arith.maximumf %41, %43 : vector<43x256xf32>
    %c0_31 = arith.constant 0 : index
    %c0_32 = arith.constant 0 : index
    %45 = vector.load %arg5[%c0_31, %c0_32] : memref<3x43xf32, #tpu.memory_space<vmem>>, vector<3x43xf32>
    %cst_33 = arith.constant dense<0.000000e+00> : vector<3x256xf32>
    %46 = tpu.matmul %45, %44, %cst_33 {dimension_numbers = #tpu.dot_dimension_numbers<[1], [0], [0], [1], [0, 0, 1, 1], [], []>} : vector<3x43xf32>, vector<43x256xf32>, vector<3x256xf32> -> vector<3x256xf32>
    %c0_34 = arith.constant 0 : index
    %c0_35 = arith.constant 0 : index
    %47 = vector.load %arg6[%c0_34, %c0_35] : memref<3x22xf32, #tpu.memory_space<vmem>>, vector<3x22xf32>
    %cst_36 = arith.constant dense<0.000000e+00> : vector<3x256xf32>
    %48 = tpu.matmul %47, %31, %cst_36 {dimension_numbers = #tpu.dot_dimension_numbers<[1], [0], [0], [1], [0, 0, 1, 1], [], []>} : vector<3x22xf32>, vector<22x256xf32>, vector<3x256xf32> -> vector<3x256xf32>
    %49 = arith.addf %46, %48 : vector<3x256xf32>
    %50 = math.cos %49 : vector<3x256xf32>
    %cst_37 = arith.constant 1.000000e+00 : f32
    %51 = vector.broadcast %cst_37 : f32 to vector<3x256xf32>
    %52 = arith.addf %50, %51 : vector<3x256xf32>
    %cst_38 = arith.constant 5.000000e-01 : f32
    %53 = vector.broadcast %cst_38 : f32 to vector<3x256xf32>
    %54 = arith.mulf %52, %53 : vector<3x256xf32>
    %c0_39 = arith.constant 0 : index
    %c0_40 = arith.constant 0 : index
    %55 = vector.load %arg7[%c0_39, %c0_40] : memref<3x256xf32, #tpu.memory_space<vmem>>, vector<3x256xf32>
    tpu.vector_store %arg7[%c0_39, %c0_40], %54 {strides = array<i32>} : memref<3x256xf32, #tpu.memory_space<vmem>>, vector<3x256xf32>,
    return
  }
  func.func @transform_0(%arg0: i32) -> (i32, i32) {
    %c0_i32 = arith.constant 0 : i32
    %c0_i32_0 = arith.constant 0 : i32
    return %c0_i32, %arg0 : i32, i32
  }
  func.func @transform_1(%arg0: i32) -> (i32, i32) {
    %c0_i32 = arith.constant 0 : i32
    %c0_i32_0 = arith.constant 0 : i32
    %c0_i32_1 = arith.constant 0 : i32
    return %c0_i32, %c0_i32_0 : i32, i32
  }
  func.func @transform_2(%arg0: i32) -> (i32, i32) {
    %c0_i32 = arith.constant 0 : i32
    %c0_i32_0 = arith.constant 0 : i32
    %c0_i32_1 = arith.constant 0 : i32
    return %c0_i32, %c0_i32_0 : i32, i32
  }
  func.func @transform_3(%arg0: i32) -> (i32, i32) {
    %c0_i32 = arith.constant 0 : i32
    %c0_i32_0 = arith.constant 0 : i32
    %c0_i32_1 = arith.constant 0 : i32
    return %c0_i32, %c0_i32_0 : i32, i32
  }
  func.func @transform_4(%arg0: i32) -> (i32, i32) {
    %c0_i32 = arith.constant 0 : i32
    %c0_i32_0 = arith.constant 0 : i32
    %c0_i32_1 = arith.constant 0 : i32
    return %c0_i32, %c0_i32_0 : i32, i32
  }
  func.func @transform_5(%arg0: i32) -> (i32, i32) {
    %c0_i32 = arith.constant 0 : i32
    %c0_i32_0 = arith.constant 0 : i32
    %c0_i32_1 = arith.constant 0 : i32
    return %c0_i32, %c0_i32_0 : i32, i32
  }
  func.func @transform_6(%arg0: i32) -> (i32, i32) {
    %c0_i32 = arith.constant 0 : i32
    %c0_i32_0 = arith.constant 0 : i32
    return %c0_i32, %arg0 : i32, i32
  }
}

</mosaic_0001>

<bundles_post_ra>
// kernel: tpu_custom_call.1
= control target key start
LH: loop header
LB: loop body
LE: loop exit
PB: predicated region body
PF: predicated region fallthrough
CT: control target
= control target key end

     0   :  { %11 = vsyncpa [#allocation4], 0  ;;  %s2035_s0 = inlined_call_operand.vmem [shape: f32[3,512], index: 0, kind: input, shape index: {}]   ;;  %s2036_s1 = inlined_call_operand.vmem [shape: f32[64,22], index: 1, kind: input, shape index: {}]   ;;  %s2037_s2 = inlined_call_operand.vmem [shape: f32[43,64], index: 2, kind: input, shape index: {}]   ;;  %s2038_s3 = inlined_call_operand.vmem [shape: f32[43,1], index: 3, kind: input, shape index: {}]   ;;  %s2039_s4 = inlined_call_operand.vmem [shape: f32[3,43], index: 4, kind: input, shape index: {}]   ;;  %s2040_s5 = inlined_call_operand.vmem [shape: f32[3,22], index: 5, kind: input, shape index: {}]   ;;  %s2041_s6 = inlined_call_operand.hbm [shape: f32[3,512], index: 6, kind: output, shape index: {}]  }
   0x1   :  { %13 = vsyncpa [#allocation4 + $0x1], 0  ;;  %s1627_s21 = smov 0   ;;  %s1629_s22 = smov 0  }
   0x2   :  { %s1631_s23 = smov 0   ;;  %s1633_s24 = smov 0  }
   0x3 LB: > { %s1648_s25 = sadd.s32 4294967295, %s1580_s24   ;;  %s1386_s26 = sadd.s32 4294967294, %s1580_s24   ;;  %s1580_s24 = sphi %s1633_s24, %s2053_s24   ;;  %s1576_s23 = sphi %s1631_s23, %s2052_s23   ;;  %s1572_s22 = sphi %s1629_s22, %s2051_s22   ;;  %s1568_s21 = sphi %s1627_s21, %s2050_s21  }
   0x4   : > { %s1652_s27 = sadd.s32 1, %s1580_s24   ;;  %s157_s28 = sadd.s32 1, %s1576_s23 }
   0x5   : > { %s154_s29 = ssub.s32 %s1580_s24, %s1652_s27  ;;  %p167_p0 = scmp.ne.s32.totalorder %s1576_s23, %s1572_s22 }
   0x6   : > { %p155_p1 = scmp.eq.s32.totalorder %s154_s29, 0  ;;  %p168_p2 = scmp.eq.s32.totalorder %s1648_s25, 1 }
   0x7   : > { %p173_p3 = scmp.ne.s32.totalorder %s1572_s22, %s1568_s21  ;;  %p174_p4 = scmp.eq.s32.totalorder %s1386_s26, 1 }
   0x8   : > { %s1663_s30 = scalar_select %p155_p1, %s1576_s23, %s157_s28  }
   0x9   : > { %p1665_p5 = por %p168_p2, %p167_p0  ;;  %p1669_p6 = por %p174_p4, %p173_p3 }
   0xa   : > { %p1389_p7 = scmp.ge.s32.totalorder %s1580_s24, 1  ;;  %p216_p8 = scmp.lt.s32.totalorder %s1580_s24, 3 }
   0xc   : > { %p217_p9 = pnand %p1389_p7, %p216_p8 }
   0xd   : > { %s1391_s9 = sshll.u32 (!%p217_p9), %s1648_s25, 1  ;;  %s1436_s15 = sshll.u32 (!%p217_p9), %s1648_s25, 7 }
   0xe   : > { %220 = sbr.rel (%p217_p9) target bundleno = 941 (0x3ad), region = 44  ;;  %p247_p10 = scmp.lt.s32.totalorder (!%p217_p9), %s1391_s9, 3 }
   0xf   : > { %s1325_s20 = scalar_lea.hbm (!%p217_p9), %s2041_s6, %s1436_s15  ;;  %s1591_s29 = smov (!%p217_p9), [#allocation3]  }
  0x13   : > { %v556_v0 = vlaneseq  ;;  %s2055_s9 = smov (!%p247_p10, %s1391_s9), 3  ;;  %v1582_v1 = vmov 1.0   ;;  %vm264_vm1 = vcmask 1042432   ;;  %v1583_v18 = vmov 0.0  }
  0x14   : > { %s1392_s10 = sshll.u32 %s2055_s9, 2  ;;  %673 = vmatprep.mubr.f32.mxu0 %v1583_v18  ;;  %879 = vmatprep.mubr.f32.mxu1 %v1583_v18  ;;  %v1584_v33 = vmov 683565275   ;;  %v1585_v35 = vmov 2475754826   ;;  %s1524_s9 = sshll.u32 %s1591_s29, 4  ;;  %s1525_s9 = int_to_ptr.vmem [resolvable:$false] %s1524_s9 }
  0x15   : > { %vm558_vm0 = vcmp.lt.s32.totalorder %v556_v0, 256  ;;  %s250_s13 = scalar_lea.vmem %s2035_s0, %s1392_s10  ;;  %v1586_v40 = vmov 2131351028   ;;  %v1587_v42 = vmov 2102212464   ;;  %s1526_s25 = scalar_lea.vmem %s1525_s9, 256 }
  0x16   : > { %561 = vst.msk [vmem:[#allocation2 + $0x25] ss:$8 sm:$0x3] %vm558_vm0, %v1582_v1  ;;  %v253_v2 = vld [vmem:[%s250_s13] sm:$0x77]  ;;  %s243_s13 = sand.u32 1, %s1572_s22  }
  0x17   : > { %v254_v3 = vadd.f32 1.5707964, %v253_v2  ;;  %v256_v4 = vcombine.high %v253_v2, %v253_v2  ;;  %475 = vst [vmem:[#allocation2] sm:$0x7] %v253_v2  ;;  %v1588_v44 = vmov 920167782  }
  0x18   : > { %v1589_v52 = vmov 1326507024   ;;  %s1390_s14 = sshll.u32 %s243_s13, 3  ;;  %s1313_s26 = scalar_lea.sflag [#allocation4], %s243_s13 }
  0x19   : > { %v259_v5 = vcombine.high %v254_v3, %v254_v3  ;;  %476 = vst [vmem:[#allocation2 + $0x8] sm:$0x7] %v256_v4  ;;  %v260_v6 = vrot.slane %v254_v3, 5  ;;  %s245_s16 = scalar_lea.vmem [#allocation3], %s1390_s14 }
  0x1a   : > { %s1327_s17 = sshll.u32 %s245_s16, 4  ;;  %s1328_s17 = int_to_ptr.vmem [resolvable:$true] %s1327_s17 }
  0x1b   : > { %v261_v7 = vrot.slane %v259_v5, 5  ;;  %v1680_v8 = vsel %vm264_vm1, %v253_v2, %v260_v6  ;;  %s1520_s28 = scalar_lea.vmem %s1328_s17, 128  ;;  %p1527_p0 = scmp.lt.s32.totalorder %s1328_s17, %s1525_s9 }
  0x1c   : > { %v270_v9 = vand.u32 2139095040, %v1680_v8  ;;  %v267_v16 = vand.u32 2147483647, %v1680_v8  ;;  %p1521_p11 = scmp.ne.s32.totalorder %s1328_s17, %s1520_s28  ;;  %p1528_p1 = scmp.lt.s32.totalorder %s1526_s25, %s1520_s28 }
  0x1d   : > { %v1684_v10 = vsel %vm264_vm1, %v256_v4, %v261_v7 }
  0x1e   : > { %v371_v11 = vand.u32 2147483647, %v1684_v10  ;;  %v374_v12 = vand.u32 2139095040, %v1684_v10  ;;  %v271_v13 = vshrl.u32 %v270_v9, 23  ;;  %v1695_v23 = vand.u32 8388607, %v267_v16  ;;  %p1522_p12 = pnand %p1521_p11, %p1665_p5  ;;  %p1529_p2 = por %p1528_p1, %p1527_p0 }
  0x1f   : > { %vm373_vm0 = vcmp.lt.s32.totalorder %v1684_v10, 0 }
  0x20   : > { %v375_v14 = vshrl.u32 %v374_v12, 23  ;;  %v378_v15 = vand.u32 8388607, %v371_v11  ;;  %v1393_v17 = vadd.s32 4294967169, %v271_v13  ;;  %v275_v30 = vor.u32 8388608, %v1695_v23  ;;  %p1523_p13 = pneg %p1522_p12 }
  0x22   : > { %v1397_v19 = vadd.s32 4294967169, %v375_v14  ;;  %v277_v20 = vadd.s32 1, %v1393_v17  ;;  %v379_v21 = vor.u32 8388608, %v378_v15  ;;  %p1530_p3 = pnand %p1529_p2, %p1523_p13 }
  0x24   : > { %v381_v22 = vadd.s32 1, %v1397_v19  ;;  %vm278_vm2 = vcmp.gt.s32.totalorder %v277_v20, 0  ;;  %v1697_v29 = vshll.u32 %v379_v21, 8 }
  0x25   : > { %v279_v24 = vsel %vm278_vm2, %v277_v20, 0  ;;  %vm1775_vm2 = vcmp.le.f32.partialorder %v371_v11, 0.7853982 }
  0x26   : > { %vm382_vm3 = vcmp.gt.s32.totalorder %v381_v22, 0  ;;  %v281_v26 = vand.u32 31, %v279_v24  ;;  %v1700_v31 = vshrl.u32 %v279_v24, 5 }
  0x27   : > { %v383_v25 = vsel %vm382_vm3, %v381_v22, 0  ;;  %vm269_vm3 = vcmp.lt.s32.totalorder %v1680_v8, 0 }
  0x28   : > { %v384_v27 = vshrl.u32 %v383_v25, 5  ;;  %v385_v28 = vand.u32 31, %v383_v25  ;;  %v282_v32 = vsub.s32 32, %v281_v26  ;;  %v284_v34 = vshll.u32 %v1584_v33, %v281_v26 }
  0x29   : > { %v287_v36 = vshll.u32 %v1585_v35, %v281_v26  ;;  %v290_v46 = vshll.u32 %v1586_v40, %v281_v26  ;;  %v293_v23 = vshll.u32 %v1587_v42, %v281_v26  ;;  %v296_v25 = vshll.u32 %v1588_v44, %v281_v26 }
  0x2a   : > { %v386_v37 = vsub.s32 32, %v385_v28  ;;  %v388_v38 = vshll.u32 %v1584_v33, %v385_v28  ;;  %v391_v39 = vshll.u32 %v1585_v35, %v385_v28  ;;  %v394_v41 = vshll.u32 %v1586_v40, %v385_v28 }
  0x2b   : > { %v397_v43 = vshll.u32 %v1587_v42, %v385_v28  ;;  %v400_v45 = vshll.u32 %v1588_v44, %v385_v28  ;;  %vm403_vm4 = vcmp.lt.s32.totalorder %v384_v27, 1  ;;  %vm404_vm5 = vcmp.lt.s32.totalorder %v384_v27, 2 }
  0x2c   : > { %v387_v47 = vshrl.u32 %v1584_v33, %v386_v37  ;;  %v389_v48 = vshrl.u32 %v1585_v35, %v386_v37  ;;  %v392_v49 = vshrl.u32 %v1586_v40, %v386_v37  ;;  %v395_v50 = vshrl.u32 %v1587_v42, %v386_v37 }
  0x2d   : > { %v398_v51 = vshrl.u32 %v1588_v44, %v386_v37  ;;  %v401_v53 = vshrl.u32 %v1589_v52, %v386_v37  ;;  %vm405_vm6 = vcmp.lt.s32.totalorder %v384_v27, 3  ;;  %vm406_vm7 = vcmp.lt.s32.totalorder %v384_v27, 4 }
  0x2e   : > { %v390_v54 = vor.u32 %v389_v48, %v388_v38  ;;  %v393_v55 = vor.u32 %v392_v49, %v391_v39  ;;  %v396_v56 = vor.u32 %v395_v50, %v394_v41  ;;  %v285_v59 = vshrl.u32 %v1585_v35, %v282_v32 }
  0x2f   : > { %v399_v57 = vor.u32 %v398_v51, %v397_v43  ;;  %v402_v58 = vor.u32 %v401_v53, %v400_v45  ;;  %v288_v60 = vshrl.u32 %v1586_v40, %v282_v32  ;;  %v283_v4 = vshrl.u32 %v1584_v33, %v282_v32 }
  0x30   : > { %v407_v61 = vsel %vm403_vm4, %v387_v47, %v390_v54  ;;  %v408_v62 = vsel %vm406_vm7, %v396_v56, 2102212464  ;;  %v411_v63 = vsel %vm403_vm4, %v390_v54, %v393_v55  ;;  %v415_v0 = vsel %vm403_vm4, %v393_v55, %v396_v56 }
  0x31   : > { %v409_v1 = vsel %vm405_vm6, %v393_v55, %v408_v62  ;;  %v412_v2 = vsel %vm406_vm7, %v399_v57, 920167782  ;;  %v416_v3 = vsel %vm406_vm7, %v402_v58, 1326507024  ;;  %v286_v9 = vor.u32 %v285_v59, %v284_v34 }
  0x32   : > { %v410_v5 = vsel %vm404_vm5, %v407_v61, %v409_v1  ;;  %v413_v6 = vsel %vm405_vm6, %v396_v56, %v412_v2  ;;  %v417_v7 = vsel %vm405_vm6, %v399_v57, %v416_v3  ;;  %v289_v14 = vor.u32 %v288_v60, %v287_v36 }
  0x33   : > { %v414_v12 = vsel %vm404_vm5, %v411_v63, %v413_v6  ;;  %v418_v13 = vsel %vm404_vm5, %v415_v0, %v417_v7  ;;  %v291_v15 = vshrl.u32 %v1587_v42, %v282_v32  ;;  %v294_v24 = vshrl.u32 %v1588_v44, %v282_v32 }
  0x34   : > { %v1730_v17 = vmul.u32.u64.low %v1697_v29, %v418_v13  ;;  %v1731_v19 = vmul.u32.u64.high %v1697_v29, %v418_v13, %v1730_v17  ;;  %v1734_v20 = vmul.u32.u64.low %v1697_v29, %v414_v12  ;;  %v1735_v21 = vmul.u32.u64.high %v1697_v29, %v414_v12, %v1734_v20 }
  0x35   : > { %v292_v22 = vor.u32 %v291_v15, %v290_v46  ;;  %v426_v27 = vmul.u32 %v1697_v29, %v410_v5  ;;  %v297_v28 = vshrl.u32 %v1589_v52, %v282_v32  ;;  %vm299_vm8 = vcmp.lt.s32.totalorder %v1700_v31, 1 }
  0x36   : > { %v315_v34 = vshll.u32 %v275_v30, 8  ;;  %v295_v36 = vor.u32 %v294_v24, %v293_v23  ;;  %vm300_vm9 = vcmp.lt.s32.totalorder %v1700_v31, 2  ;;  %vm301_vm10 = vcmp.lt.s32.totalorder %v1700_v31, 3 }
  0x37   : > { %vm302_vm11 = vcmp.lt.s32.totalorder %v1700_v31, 4  ;;  %vm428_vm12 = vc.u32 %v1731_v19, %v1734_v20  ;;  %v429_v37 = vadd.s32 1, %v1735_v21  ;;  %v298_v38 = vor.u32 %v297_v28, %v296_v25 }
  0x38   : > { %v307_v26 = vsel %vm299_vm8, %v286_v9, %v289_v14  ;;  %v303_v39 = vsel %vm299_vm8, %v283_v4, %v286_v9  ;;  %v304_v29 = vsel %vm302_vm11, %v292_v22, 2102212464  ;;  %v308_v41 = vsel %vm302_vm11, %v295_v36, 920167782 }
  0x39   : > { %v311_v32 = vsel %vm299_vm8, %v289_v14, %v292_v22  ;;  %v430_v43 = vsel %vm428_vm12, %v429_v37, %v1735_v21  ;;  %v305_v30 = vsel %vm301_vm10, %v289_v14, %v304_v29  ;;  %v309_v45 = vsel %vm301_vm10, %v292_v22, %v308_v41 }
  0x3a   : > { %v312_v46 = vsel %vm302_vm11, %v298_v38, 1326507024  ;;  %v431_v47 = vadd.s32 %v430_v43, %v426_v27  ;;  %v310_v48 = vsel %vm300_vm9, %v307_v26, %v309_v45  ;;  %v306_v50 = vsel %vm300_vm9, %v303_v39, %v305_v30 }
  0x3b   : > { %v313_v49 = vsel %vm301_vm10, %v295_v36, %v312_v46  ;;  %v1761_v53 = vmul.u32.u64.low %v315_v34, %v310_v48  ;;  %v1762_v54 = vmul.u32.u64.high %v315_v34, %v310_v48, %v1761_v53  ;;  %v322_v59 = vmul.u32 %v315_v34, %v306_v50 }
  0x3c   : > { %v314_v51 = vsel %vm300_vm9, %v311_v32, %v313_v49  ;;  %v432_v55 = vadd.s32 536870912, %v431_v47  ;;  %v427_v9 = vadd.s32 %v1734_v20, %v1731_v19  ;;  %vm268_vm4 = vcmp.le.f32.partialorder %v267_v16, 0.7853982 }
  0x3d   : > { %v1764_v56 = vmul.u32.u64.low %v315_v34, %v314_v51  ;;  %v1765_v57 = vmul.u32.u64.high %v315_v34, %v314_v51, %v1764_v56  ;;  %v325_v60 = vadd.s32 1, %v1762_v54  ;;  %vm463_vm8 = vweird.f32 %v1684_v10 }
  0x3e   : > { %v433_v58 = vshrl.u32 %v432_v55, 30  ;;  %vm359_vm12 = vweird.f32 %v1680_v8 }
  0x3f   : > { %vm324_vm13 = vc.u32 %v1765_v57, %v1761_v53  ;;  %v323_v37 = vadd.s32 %v1761_v53, %v1765_v57 }
  0x40   : > { %v434_v61 = vshll.u32 %v433_v58, 30  ;;  %v326_v62 = vsel %vm324_vm13, %v325_v60, %v1762_v54  ;;  %v457_v41 = vsub.s32 4, %v433_v58  ;;  %vm499_vm13 = vcmask 1044480  }
  0x41   : > { %v327_v0 = vadd.s32 %v326_v62, %v322_v59 }
  0x42   : > { %v435_v63 = vsub.s32 %v431_v47, %v434_v61  ;;  %v458_v49 = vsel %vm373_vm0, %v457_v41, %v433_v58 }
  0x43   : > { %v328_v1 = vadd.s32 536870912, %v327_v0  ;;  %v460_v11 = vsel %vm1775_vm2, 0, %v458_v49 }
  0x44   : > { %v437_v31 = vsub.s32 0, %v435_v63  ;;  %v464_v57 = vadd.s32 3, %v460_v11 }
  0x45   : > { %v329_v3 = vshrl.u32 %v328_v1, 30 }
  0x46   : > { %v1398_v2 = vmin.u32 %v437_v31, %v435_v63  ;;  %v465_v62 = vand.u32 3, %v464_v57 }
  0x47   : > { %v330_v5 = vshll.u32 %v329_v3, 30  ;;  %v353_v56 = vsub.s32 4, %v329_v3 }
  0x48   : > { %v439_v4 = vclz %v1398_v2  ;;  %vm470_vm5 = vcmp.eq.s32.totalorder %v465_v62, 2  ;;  %vm467_vm6 = vcmp.eq.s32.totalorder %v465_v62, 0  ;;  %vm466_vm7 = vcmp.lt.s32.totalorder %v465_v62, 2 }
  0x49   : > { %v331_v7 = vsub.s32 %v327_v0, %v330_v5  ;;  %v354_v60 = vsel %vm269_vm3, %v353_v56, %v329_v3 }
  0x4a   : > { %v1399_v6 = vadd.s32 4294967294, %v439_v4 }
  0x4b   : > { %v333_v13 = vsub.s32 0, %v331_v7 }
  0x4c   : > { %vm1400_vm14 = vcmp.lt.s32.totalorder %v1399_v6, 0 }
  0x4d   : > { %v442_v12 = vsel %vm1400_vm14, 0, %v1399_v6  ;;  %v1394_v21 = vmin.u32 %v333_v13, %v331_v7  ;;  %vm602_vm14 = vcmask 1045504  }
  0x4e   : > { %v443_v14 = vsub.s32 32, %v442_v12  ;;  %v444_v15 = vshll.u32 %v435_v63, %v442_v12  ;;  %v447_v17 = vsub.s32 4294967266, %v442_v12  ;;  %v356_v63 = vsel %vm268_vm4, 0, %v354_v60 }
  0x4f   : > { %v335_v24 = vclz %v1394_v21  ;;  %v360_v2 = vadd.s32 3, %v356_v63 }
  0x50   : > { %v445_v22 = vshrl.u32 %v427_v9, %v443_v14  ;;  %v448_v23 = vadd.s32 127, %v447_v17 }
  0x51   : > { %v1395_v28 = vadd.s32 4294967294, %v335_v24  ;;  %v361_v3 = vand.u32 3, %v360_v2 }
  0x52   : > { %v446_v25 = vor.u32 %v445_v22, %v444_v15  ;;  %v449_v27 = vshll.u32 %v448_v23, 23 }
  0x53   : > { %vm1396_vm15 = vcmp.lt.s32.totalorder %v1395_v28, 0  ;;  %vm366_vm9 = vcmp.eq.s32.totalorder %v361_v3, 2  ;;  %vm363_vm10 = vcmp.eq.s32.totalorder %v361_v3, 0  ;;  %vm362_vm11 = vcmp.lt.s32.totalorder %v361_v3, 2  ;;  %v572_v3 = vld [vmem:[%s2036_s1 + $0x18] sm:$0xff] }
  0x54   : > { %v450_v34 = vor.u32 4788187, %v449_v27  ;;  %v453_v36 = vcvt.s32.f32 %v446_v25  ;;  %v338_v19 = vsel %vm1396_vm15, 0, %v1395_v28  ;;  %vm577_vm15 = vcmask 179200  }
  0x55   : > { %v339_v20 = vsub.s32 32, %v338_v19  ;;  %v340_v26 = vshll.u32 %v331_v7, %v338_v19  ;;  %v343_v39 = vsub.s32 4294967266, %v338_v19 }
  0x56   : > { %v451_v38 = vand.u32 2147483647, %v450_v34 }
  0x57   : > { %v341_v32 = vshrl.u32 %v323_v37, %v339_v20  ;;  %v344_v43 = vadd.s32 127, %v343_v39 }
  0x58   : > { %v454_v29 = vmul.f32 %v453_v36, %v451_v38 }
  0x59   : > { %v342_v46 = vor.u32 %v341_v32, %v340_v26  ;;  %v345_v47 = vshll.u32 %v344_v43, 23 }
  0x5a   : > { %v455_v45 = vxor.u32 2147483648, %v454_v29 }
  0x5b   : > { %v346_v51 = vor.u32 4788187, %v345_v47  ;;  %v349_v53 = vcvt.s32.f32 %v342_v46 }
  0x5c   : > { %v456_v48 = vsel %vm373_vm0, %v455_v45, %v454_v29  ;;  %vm796_vm0 = vcmask 523264  }
  0x5d   : > { %v459_v50 = vsel %vm1775_vm2, %v1684_v10, %v456_v48  ;;  %v347_v54 = vand.u32 2147483647, %v346_v51 }
  0x5e   : > { %1504 = vcosq.f32 %v459_v50 }
  0x5f   : > { %1506 = vsinq.f32 %v459_v50  ;;  %v350_v55 = vmul.f32 %v349_v53, %v347_v54 }
  0x61   : > { %v351_v58 = vxor.u32 2147483648, %v350_v55 }
  0x63   : > { %v352_v59 = vsel %vm269_vm3, %v351_v58, %v350_v55 }
  0x64   : > { %v355_v61 = vsel %vm268_vm4, %v1680_v8, %v352_v59 }
  0x65   : > { %1508 = vcosq.f32 %v355_v61 }
  0x66   : > { %1510 = vsinq.f32 %v355_v61 }
  0x6b   : > { %v1505_v0 = vpop.eup %1504 }
  0x6c   : > { %v1507_v31 = vpop.eup %1506  ;;  %v471_v1 = vxor.u32 2147483648, %v1505_v0 }
  0x6d   : > { %v468_v4 = vxor.u32 2147483648, %v1507_v31 }
  0x6e   : > { %v472_v16 = vsel %vm470_vm5, %v471_v1, %v1507_v31 }
  0x6f   : > { %v469_v5 = vsel %vm467_vm6, %v1505_v0, %v468_v4 }
  0x70   : > { %v473_v6 = vsel %vm466_vm7, %v469_v5, %v472_v16  ;;  %v569_v16 = vld [vmem:[%s2036_s1] sm:$0xff]  ;;  %v570_v5 = vld [vmem:[%s2036_s1 + $0x8] sm:$0xff] }
  0x71   : > { %v474_v7 = vsel %vm463_vm8, nan, %v473_v6  ;;  %v571_v6 = vld [vmem:[%s2036_s1 + $0x10] sm:$0xff] }
  0x72   : > { %v480_v9 = vrot.slane %v474_v7, 5  ;;  %v1509_v12 = vpop.eup %1508  ;;  %v573_v7 = vld [vmem:[%s2036_s1 + $0x20] sm:$0xff] }
  0x73   : > { %v1511_v13 = vpop.eup %1510  ;;  %v367_v14 = vxor.u32 2147483648, %v1509_v12 }
  0x74   : > { %484 = vst [vmem:[#allocation2 + $0x8] sm:$0xf8] %v480_v9  ;;  %486 = vst [vmem:[#allocation2 + $0x18] sm:$0x1] %v480_v9  ;;  %v364_v15 = vxor.u32 2147483648, %v1511_v13  ;;  %v574_v9 = vld [vmem:[%s2036_s1 + $0x28] sm:$0xff] }
  0x75   : > { %v368_v17 = vsel %vm366_vm9, %v367_v14, %v1511_v13  ;;  %v576_v13 = vld [vmem:[%s2036_s1 + $0x38] sm:$0xff] }
  0x76   : > { %v365_v21 = vsel %vm363_vm10, %v1509_v12, %v364_v15  ;;  %v575_v12 = vld [vmem:[%s2036_s1 + $0x30] sm:$0xff]  ;;  %v763_v14 = vld [vmem:[%s2038_s3 + $0x18] sm:$0xff]  ;;  %v765_v15 = vld [vmem:[%s2038_s3 + $0x28] sm:$0x7] }
  0x77   : > { %v369_v10 = vsel %vm362_vm11, %v365_v21, %v368_v17  ;;  %v1590_v17 = vmov 0   ;;  %v762_v21 = vld [vmem:[%s2038_s3 + $0x10] sm:$0xff] }
  0x78   : > { %v370_v22 = vsel %vm359_vm12, nan, %v369_v10  ;;  %1502 = vset.pattern.permute.xlu1 %v1590_v17  ;;  %1501 = vset.pattern.permute.xlu0 %v1590_v17  ;;  %v764_v10 = vld [vmem:[%s2038_s3 + $0x20] sm:$0xff] }
  0x79   : > { %v479_v36 = vrot.slane %v370_v22, 5  ;;  %783 = vperm.xlu1 %1502, %v763_v14   ;;  %793 = vperm.xlu0 %1501, %v765_v15   ;;  %v760_v22 = vld [vmem:[%s2038_s3] sm:$0xff]  ;;  %v756_v14 = vld [vmem:[%s2037_s2 + $0x10] sm:$0xff]  ;;  %v757_v15 = vld [vmem:[%s2037_s2 + $0x18] sm:$0xff] }
  0x7a   : > { %v758_v17 = vld [vmem:[%s2037_s2 + $0x20] sm:$0xff] }
  0x7b   : > { %v488_v23 = vld [vmem:[#allocation2 + $0x8] sm:$0x38]  ;;  %v490_v24 = vld [vmem:[#allocation2 + $0x8] sm:$0xc0]  ;;  %v492_v25 = vld [vmem:[#allocation2 + $0x18] sm:$0x1] }
  0x7c   : > { %v494_v27 = vmul.f32 2.0, %v488_v23  ;;  %v503_v28 = vrot.slane %v490_v24, 3  ;;  %v504_v34 = vrot.slane %v492_v25, 3  ;;  %483 = vst [vmem:[#allocation2] sm:$0xf8] %v479_v36  ;;  %v564_v2 = vld [vmem:[#allocation2 + $0x8] sm:$0xff] }
  0x7d   : > { %485 = vst [vmem:[#allocation2 + $0x10] sm:$0x1] %v479_v36  ;;  %778 = vperm.xlu1 %1502, %v762_v21   ;;  %788 = vperm.xlu0 %1501, %v764_v10   ;;  %v759_v21 = vld [vmem:[%s2037_s2 + $0x28] sm:$0x7]  ;;  %v941_v10 = vld [vmem:[%s2040_s5] sm:$0x7] }
  0x7e   : > { %v505_v37 = vsel %vm499_vm13, %v503_v28, %v504_v34  ;;  %v511_v38 = vmul.f32 %v494_v27, %v488_v23  ;;  %v761_v23 = vld [vmem:[%s2038_s3 + $0x8] sm:$0xff] }
  0x7f   : > { %v509_v19 = vmul.f32 %v505_v37, %v494_v27 }
  0x80   : > { %v513_v20 = vsub.f32 1.0, %v511_v38 }
  0x81   : > { %v531_v8 = vmul.f32 2.0, %v509_v19  ;;  %v517_v26 = vrot.slane %v509_v19, 2  ;;  %768 = vperm.xlu1 %1502, %v760_v22   ;;  %773 = vperm.xlu0 %1501, %v761_v23  }
  0x82   : > { %v525_v39 = vrot.slane %v513_v20, 7 }
  0x83   : > { %v533_v29 = vmul.f32 %v531_v8, %v513_v20  ;;  %v545_v41 = vmul.f32 %v531_v8, %v509_v19  ;;  %521 = vst [vmem:[#allocation2 + $0x18] sm:$0xe] %v517_v26  ;;  %v487_v30 = vld [vmem:[#allocation2] sm:$0x38]  ;;  %v489_v45 = vld [vmem:[#allocation2] sm:$0xc0] }
  0x84   : > { %529 = vst [vmem:[#allocation2 + $0x18] sm:$0x70] %v525_v39  ;;  %v491_v46 = vld [vmem:[#allocation2 + $0x10] sm:$0x1]  ;;  %v493_v47 = vmul.f32 2.0, %v487_v30  ;;  %v500_v48 = vrot.slane %v489_v45, 3 }
  0x85   : > { %v537_v32 = vrot.slane %v533_v29, 4  ;;  %v547_v43 = vsub.f32 1.0, %v545_v41  ;;  %v501_v50 = vrot.slane %v491_v46, 3  ;;  %v563_v4 = vld [vmem:[#allocation2] sm:$0xff] }
  0x86   : > { %v510_v51 = vmul.f32 %v493_v47, %v487_v30 }
  0x87   : > { %543 = vst [vmem:[#allocation2 + $0x28] ss:$-12 sps:$4 sm:$0x83] %v537_v32   ;;  %v551_v49 = vrot.slane %v547_v43, 1  ;;  %v502_v53 = vsel %vm499_vm13, %v500_v48, %v501_v50 }
  0x88   : > { %v508_v54 = vmul.f32 %v502_v53, %v493_v47  ;;  %v512_v11 = vsub.f32 1.0, %v510_v51 }
  0x89   : > { %555 = vst [vmem:[#allocation2 + $0x28] sm:$0x1c] %v551_v49 }
  0x8a   : > { %v530_v55 = vmul.f32 2.0, %v508_v54  ;;  %v516_v56 = vrot.slane %v508_v54, 2  ;;  %v524_v57 = vrot.slane %v512_v11, 7 }
  0x8c   : > { %v532_v58 = vmul.f32 %v530_v55, %v512_v11  ;;  %v544_v59 = vmul.f32 %v530_v55, %v508_v54  ;;  %520 = vst [vmem:[#allocation2 + $0x10] sm:$0xe] %v516_v56  ;;  %528 = vst [vmem:[#allocation2 + $0x10] sm:$0x70] %v524_v57 }
  0x8e   : > { %v536_v61 = vrot.slane %v532_v58, 4  ;;  %v546_v62 = vsub.f32 1.0, %v544_v59  ;;  %v566_v0 = vld [vmem:[#allocation2 + $0x18] sm:$0xff] }
  0x90   : > { %v568_v60 = vld [vmem:[#allocation2 + $0x28] sm:$0x3f]  ;;  %542 = vst [vmem:[#allocation2 + $0x20] ss:$-12 sps:$4 sm:$0x83] %v536_v61   ;;  %v550_v63 = vrot.slane %v546_v62, 1 }
  0x91   : > { %1401 = vmatprep.subr.msk.mxu0 %vm602_vm14, %v568_v60 }
  0x92   : > { %554 = vst [vmem:[#allocation2 + $0x20] sm:$0x1c] %v550_v63 }
  0x97   : > { %v565_v1 = vld [vmem:[#allocation2 + $0x10] sm:$0xff] }
  0x99   : > { %v567_v31 = vld [vmem:[#allocation2 + $0x20] sm:$0x3f] }
  0x9a   : > { %1402 = vmatpush1.msk.msra.mxu0 %vm602_vm14, %v567_v31 }
  0x9b   : > { %637 = vmatprep.subr.mxu0 %v566_v0 }
  0x9c   : > { %638 = vmatpush1.msra.mxu0 %v565_v1 }
  0x9d   : > { %639 = vmatprep.subr.mxu0 %v564_v2 }
  0x9e   : > { %640 = vmatpush1.msra.mxu0 %v563_v4 }
  0x9f   : > { %1403 = vmatmul.mubr.msk.f32.vlgmr.msra.gmra.mxu0 %vm577_vm15, %v569_v16  ;;  %1417 = vmatprep.subr.msk.mxu0 %vm602_vm14, %v568_v60 }
  0xa0   : > { %679 = vmatprep.mubr.f32.mxu0 %v1583_v18  ;;  %1418 = vmatpush1.msk.msra.mxu0 %vm602_vm14, %v567_v31 }
  0xa1   : > { %973 = vmatprep.subr.mxu0 %v566_v0 }
  0xa2   : > { %974 = vmatpush1.msra.mxu0 %v565_v1 }
  0xa3   : > { %1404 = vmatmul.mubr.msk.f32.gmra.mxu0 %vm577_vm15, %v570_v5  ;;  %975 = vmatprep.subr.mxu0 %v564_v2 }
  0xa4   : > { %685 = vmatprep.mubr.f32.mxu0 %v1583_v18  ;;  %976 = vmatpush1.msra.mxu0 %v563_v4 }
  0xa7   : > { %1405 = vmatmul.mubr.msk.f32.gmra.mxu0 %vm577_vm15, %v571_v6 }
  0xa8   : > { %691 = vmatprep.mubr.f32.mxu0 %v1583_v18 }
  0xab   : > { %1406 = vmatmul.mubr.msk.f32.gmra.mxu0 %vm577_vm15, %v572_v3 }
  0xac   : > { %697 = vmatprep.mubr.f32.mxu0 %v1583_v18 }
  0xaf   : > { %1407 = vmatmul.mubr.msk.f32.gmra.mxu0 %vm577_vm15, %v573_v7 }
  0xb0   : > { %703 = vmatprep.mubr.f32.mxu0 %v1583_v18 }
  0xb3   : > { %1408 = vmatmul.mubr.msk.f32.gmra.mxu0 %vm577_vm15, %v574_v9 }
  0xb4   : > { %709 = vmatprep.mubr.f32.mxu0 %v1583_v18 }
  0xb7   : > { %1409 = vmatmul.mubr.msk.f32.gmra.mxu0 %vm577_vm15, %v575_v12  ;;  %v754_v12 = vld [vmem:[%s2037_s2] sm:$0xff] }
  0xb8   : > { %715 = vmatprep.mubr.f32.mxu0 %v1583_v18 }
  0xbb   : > { %1410 = vmatmul.mubr.msk.f32.gmra.mxu0 %vm577_vm15, %v576_v13  ;;  %v755_v13 = vld [vmem:[%s2037_s2 + $0x8] sm:$0xff] }
  0xbc   : > { %1009 = vmatprep.mubr.f32.mxu0 %v1583_v18 }
  0xbf   : > { %1419 = vmatmul.mubr.msk.f32.vlgmr.msra.gmra.mxu0 %vm577_vm15, %v941_v10 }
 0x15f   : > { %v1854_v24 = vpop.f32.mrf.mxu0 }
 0x160   : > { %v722_v16 = vmul.f32 0.01, %v1854_v24 }
 0x161   : > { %v1856_v25 = vpop.f32.mrf.mxu0 }
 0x162   : > { %v723_v2 = vmul.f32 0.01, %v1856_v25  ;;  %v738_v9 = vmax.f32 %v1854_v24, %v722_v16 }
 0x163   : > { %v681_v27 = vpop.f32.mrf.mxu0 }
 0x164   : > { %v724_v31 = vmul.f32 0.01, %v681_v27  ;;  %v739_v7 = vmax.f32 %v1856_v25, %v723_v2 }
 0x165   : > { %v683_v28 = vpop.f32.mrf.mxu0 }
 0x166   : > { %v725_v63 = vmul.f32 0.01, %v683_v28  ;;  %v740_v3 = vmax.f32 %v681_v27, %v724_v31 }
 0x167   : > { %v687_v34 = vpop.f32.mrf.mxu0 }
 0x168   : > { %v726_v61 = vmul.f32 0.01, %v687_v34  ;;  %v741_v6 = vmax.f32 %v683_v28, %v725_v63 }
 0x169   : > { %v689_v36 = vpop.f32.mrf.mxu0 }
 0x16a   : > { %v727_v59 = vmul.f32 0.01, %v689_v36  ;;  %v742_v5 = vmax.f32 %v687_v34, %v726_v61 }
 0x16b   : > { %v693_v37 = vpop.f32.mrf.mxu0 }
 0x16c   : > { %v728_v57 = vmul.f32 0.01, %v693_v37  ;;  %v743_v4 = vmax.f32 %v689_v36, %v727_v59  ;;  %v794_v36 = vpop.permute.xlu0 %793 }
 0x16d   : > { %v695_v38 = vpop.f32.mrf.mxu0 }
 0x16e   : > { %v729_v55 = vmul.f32 0.01, %v695_v38  ;;  %v744_v1 = vmax.f32 %v693_v37, %v728_v57 }
 0x16f   : > { %v699_v19 = vpop.f32.mrf.mxu0 }
 0x170   : > { %v730_v54 = vmul.f32 0.01, %v699_v19  ;;  %v745_v0 = vmax.f32 %v695_v38, %v729_v55  ;;  %v784_v38 = vpop.permute.xlu1 %783 }
 0x171   : > { %v701_v20 = vpop.f32.mrf.mxu0 }
 0x172   : > { %v731_v51 = vmul.f32 0.01, %v701_v20  ;;  %v746_v62 = vmax.f32 %v699_v19, %v730_v54 }
 0x173   : > { %v705_v8 = vpop.f32.mrf.mxu0 }
 0x174   : > { %v732_v49 = vmul.f32 0.01, %v705_v8  ;;  %v747_v60 = vmax.f32 %v701_v20, %v731_v51 }
 0x175   : > { %v707_v26 = vpop.f32.mrf.mxu0 }
 0x176   : > { %v733_v47 = vmul.f32 0.01, %v707_v26  ;;  %v748_v58 = vmax.f32 %v705_v8, %v732_v49  ;;  %v789_v8 = vpop.permute.xlu0 %788 }
 0x177   : > { %v711_v39 = vpop.f32.mrf.mxu0 }
 0x178   : > { %v734_v46 = vmul.f32 0.01, %v711_v39  ;;  %v749_v56 = vmax.f32 %v707_v26, %v733_v47  ;;  %v779_v26 = vpop.permute.xlu1 %778 }
 0x179   : > { %v713_v29 = vpop.f32.mrf.mxu0 }
 0x17a   : > { %v735_v30 = vmul.f32 0.01, %v713_v29  ;;  %v750_v11 = vmax.f32 %v711_v39, %v734_v46  ;;  %v774_v47 = vpop.permute.xlu0 %773 }
 0x17b   : > { %v717_v41 = vpop.f32.mrf.mxu0 }
 0x17c   : > { %v736_v32 = vmul.f32 0.01, %v717_v41  ;;  %v751_v53 = vmax.f32 %v713_v29, %v735_v30  ;;  %v769_v54 = vpop.permute.xlu1 %768 }
 0x17d   : > { %v719_v43 = vpop.f32.mrf.mxu0 }
 0x17e   : > { %v737_v45 = vmul.f32 0.01, %v719_v43  ;;  %v752_v50 = vmax.f32 %v717_v41, %v736_v32 }
 0x180   : > { %v753_v48 = vmax.f32 %v719_v43, %v737_v45 }
 0x182   : > { %831 = vmatprep.subr.mxu1 %v753_v48 }
 0x183   : > { %832 = vmatpush1.msra.mxu1 %v752_v50 }
 0x184   : > { %833 = vmatprep.subr.mxu1 %v751_v53 }
 0x185   : > { %834 = vmatpush1.msra.mxu1 %v750_v11 }
 0x186   : > { %835 = vmatprep.subr.mxu1 %v749_v56 }
 0x187   : > { %836 = vmatpush1.msra.mxu1 %v748_v58 }
 0x188   : > { %837 = vmatprep.subr.mxu1 %v747_v60 }
 0x189   : > { %838 = vmatpush1.msra.mxu1 %v746_v62 }
 0x18a   : > { %839 = vmatprep.subr.mxu1 %v745_v0 }
 0x18b   : > { %840 = vmatpush1.msra.mxu1 %v744_v1 }
 0x18c   : > { %841 = vmatprep.subr.mxu1 %v743_v4 }
 0x18d   : > { %842 = vmatpush1.msra.mxu1 %v742_v5 }
 0x18e   : > { %843 = vmatprep.subr.mxu1 %v741_v6 }
 0x18f   : > { %844 = vmatpush1.msra.mxu1 %v740_v3 }
 0x190   : > { %845 = vmatprep.subr.mxu1 %v739_v7 }
 0x191   : > { %846 = vmatpush1.msra.mxu1 %v738_v9 }
 0x192   : > { %1411 = vmatmul.mubr.msk.f32.vlgmr.msra.gmra.mxu1 %vm796_vm0, %v754_v12 }
 0x193   : > { %885 = vmatprep.mubr.f32.mxu1 %v1583_v18 }
 0x196   : > { %1412 = vmatmul.mubr.msk.f32.gmra.mxu1 %vm796_vm0, %v755_v13 }
 0x197   : > { %891 = vmatprep.mubr.f32.mxu1 %v1583_v18 }
 0x19a   : > { %1413 = vmatmul.mubr.msk.f32.gmra.mxu1 %vm796_vm0, %v756_v14 }
 0x19b   : > { %897 = vmatprep.mubr.f32.mxu1 %v1583_v18 }
 0x19e   : > { %1414 = vmatmul.mubr.msk.f32.gmra.mxu1 %vm796_vm0, %v757_v15  ;;  %v940_v15 = vld [vmem:[%s2039_s4] sm:$0x7] }
 0x19f   : > { %903 = vmatprep.mubr.f32.mxu1 %v1583_v18 }
 0x1a2   : > { %1415 = vmatmul.mubr.msk.f32.gmra.mxu1 %vm796_vm0, %v758_v17  ;;  %v1011_v17 = vpop.f32.mrf.mxu0 }
 0x1a3   : > { %909 = vmatprep.mubr.f32.mxu1 %v1583_v18 }
 0x1a6   : > { %1416 = vmatmul.mubr.msk.f32.gmra.mxu1 %vm796_vm0, %v759_v21 }
 0x1a7   : > { %1090 = vmatprep.mubr.f32.mxu1 %v1583_v18 }
 0x252   : > { %v881_v22 = vpop.f32.mrf.mxu1 }
 0x253   : > { %v882_v63 = vadd.f32 %v881_v22, %v769_v54  ;;  %v1013_v22 = vpop.f32.mrf.mxu0 }
 0x254   : > { %v883_v23 = vpop.f32.mrf.mxu1 }
 0x255   : > { %v884_v60 = vadd.f32 %v883_v23, %v769_v54  ;;  %v916_v3 = vmul.f32 0.01, %v882_v63 }
 0x256   : > { %v887_v24 = vpop.f32.mrf.mxu1 }
 0x257   : > { %v888_v57 = vadd.f32 %v887_v24, %v774_v47  ;;  %v917_v5 = vmul.f32 0.01, %v884_v60  ;;  %v928_v14 = vmax.f32 %v882_v63, %v916_v3 }
 0x258   : > { %v889_v25 = vpop.f32.mrf.mxu1 }
 0x259   : > { %v890_v11 = vadd.f32 %v889_v25, %v774_v47  ;;  %v918_v4 = vmul.f32 0.01, %v888_v57  ;;  %v929_v13 = vmax.f32 %v884_v60, %v917_v5 }
 0x25a   : > { %v893_v27 = vpop.f32.mrf.mxu1 }
 0x25b   : > { %v894_v51 = vadd.f32 %v893_v27, %v779_v26  ;;  %v919_v1 = vmul.f32 0.01, %v890_v11  ;;  %v930_v12 = vmax.f32 %v888_v57, %v918_v4 }
 0x25c   : > { %v895_v28 = vpop.f32.mrf.mxu1 }
 0x25d   : > { %v896_v48 = vadd.f32 %v895_v28, %v779_v26  ;;  %v920_v0 = vmul.f32 0.01, %v894_v51  ;;  %v931_v9 = vmax.f32 %v890_v11, %v919_v1 }
 0x25e   : > { %v899_v34 = vpop.f32.mrf.mxu1 }
 0x25f   : > { %v900_v45 = vadd.f32 %v899_v34, %v784_v38  ;;  %v921_v61 = vmul.f32 0.01, %v896_v48  ;;  %v932_v7 = vmax.f32 %v894_v51, %v920_v0 }
 0x260   : > { %v901_v37 = vpop.f32.mrf.mxu1 }
 0x261   : > { %v902_v43 = vadd.f32 %v901_v37, %v784_v38  ;;  %v922_v58 = vmul.f32 0.01, %v900_v45  ;;  %v933_v6 = vmax.f32 %v896_v48, %v921_v61 }
 0x262   : > { %v905_v19 = vpop.f32.mrf.mxu1 }
 0x263   : > { %v906_v41 = vadd.f32 %v905_v19, %v789_v8  ;;  %v923_v55 = vmul.f32 0.01, %v902_v43  ;;  %v934_v16 = vmax.f32 %v900_v45, %v922_v58 }
 0x264   : > { %v907_v20 = vpop.f32.mrf.mxu1 }
 0x265   : > { %v908_v39 = vadd.f32 %v907_v20, %v789_v8  ;;  %v924_v53 = vmul.f32 0.01, %v906_v41  ;;  %v935_v2 = vmax.f32 %v902_v43, %v923_v55 }
 0x266   : > { %v911_v18 = vpop.f32.mrf.mxu1 }
 0x267   : > { %v912_v29 = vadd.f32 %v911_v18, %v794_v36  ;;  %v925_v49 = vmul.f32 0.01, %v908_v39  ;;  %v936_v31 = vmax.f32 %v906_v41, %v924_v53 }
 0x268   : > { %v913_v32 = vpop.f32.mrf.mxu1 }
 0x269   : > { %v914_v30 = vadd.f32 %v913_v32, %v794_v36  ;;  %v926_v46 = vmul.f32 0.01, %v912_v29  ;;  %v937_v62 = vmax.f32 %v908_v39, %v925_v49 }
 0x26b   : > { %v927_v50 = vmul.f32 0.01, %v914_v30  ;;  %v938_v59 = vmax.f32 %v912_v29, %v926_v46 }
 0x26d   : > { %v939_v56 = vmax.f32 %v914_v30, %v927_v50 }
 0x26f   : > { %1420 = vmatprep.subr.msk.mxu1 %vm264_vm1, %v939_v56 }
 0x270   : > { %1421 = vmatpush1.msk.msra.mxu1 %vm264_vm1, %v938_v59  ;;  %vm1016_vm1 = vcmask 351232  }
 0x271   : > { %1048 = vmatprep.subr.mxu1 %v937_v62 }
 0x272   : > { %1049 = vmatpush1.msra.mxu1 %v936_v31 }
 0x273   : > { %1050 = vmatprep.subr.mxu1 %v935_v2 }
 0x274   : > { %1051 = vmatpush1.msra.mxu1 %v934_v16 }
 0x275   : > { %1052 = vmatprep.subr.mxu1 %v933_v6 }
 0x276   : > { %1053 = vmatpush1.msra.mxu1 %v932_v7 }
 0x277   : > { %1054 = vmatprep.subr.mxu1 %v931_v9 }
 0x278   : > { %1055 = vmatpush1.msra.mxu1 %v930_v12 }
 0x279   : > { %1056 = vmatprep.subr.mxu1 %v929_v13 }
 0x27a   : > { %1057 = vmatpush1.msra.mxu1 %v928_v14 }
 0x27b   : > { %1422 = vmatmul.mubr.msk.f32.vlgmr.msra.gmra.mxu1 %vm1016_vm1, %v940_v15 }
 0x33b   : > { %v1092_v21 = vpop.f32.mrf.mxu1 }
 0x33c   : > { %v1901_v10 = vadd.f32 %v1092_v21, %v1011_v17 }
 0x33d   : > { %v1094_v23 = vpop.f32.mrf.mxu1 }
 0x33e   : > { %v1097_v24 = vand.u32 2147483647, %v1901_v10  ;;  %v1100_v25 = vand.u32 2139095040, %v1901_v10  ;;  %v1905_v27 = vadd.f32 %v1094_v23, %v1013_v22  ;;  %vm1099_vm0 = vcmp.lt.s32.totalorder %v1901_v10, 0 }
 0x340   : > { %v1101_v28 = vshrl.u32 %v1100_v25, 23  ;;  %v1104_v34 = vand.u32 8388607, %v1097_v24  ;;  %v1203_v36 = vand.u32 2139095040, %v1905_v27  ;;  %v1200_v38 = vand.u32 2147483647, %v1905_v27 }
 0x341   : > { %vm1976_vm1 = vcmp.le.f32.partialorder %v1097_v24, 0.7853982 }
 0x342   : > { %v1423_v37 = vadd.s32 4294967169, %v1101_v28  ;;  %v1204_v19 = vshrl.u32 %v1203_v36, 23  ;;  %v1105_v8 = vor.u32 8388608, %v1104_v34  ;;  %v1207_v26 = vand.u32 8388607, %v1200_v38 }
 0x344   : > { %v1107_v20 = vadd.s32 1, %v1423_v37  ;;  %v1427_v18 = vadd.s32 4294967169, %v1204_v19  ;;  %v1913_v43 = vshll.u32 %v1105_v8, 8  ;;  %v1208_v46 = vor.u32 8388608, %v1207_v26 }
 0x346   : > { %vm1108_vm2 = vcmp.gt.s32.totalorder %v1107_v20, 0  ;;  %v1210_v29 = vadd.s32 1, %v1427_v18  ;;  %v1248_v9 = vshll.u32 %v1208_v46, 8 }
 0x347   : > { %v1109_v39 = vsel %vm1108_vm2, %v1107_v20, 0  ;;  %vm1202_vm2 = vcmp.lt.s32.totalorder %v1905_v27, 0 }
 0x348   : > { %v1110_v41 = vshrl.u32 %v1109_v39, 5  ;;  %v1111_v32 = vand.u32 31, %v1109_v39  ;;  %vm1211_vm3 = vcmp.gt.s32.totalorder %v1210_v29, 0 }
 0x349   : > { %v1212_v60 = vsel %vm1211_vm3, %v1210_v29, 0  ;;  %vm1988_vm3 = vcmp.le.f32.partialorder %v1200_v38, 0.7853982 }
 0x34a   : > { %v1112_v30 = vsub.s32 32, %v1111_v32  ;;  %v1114_v45 = vshll.u32 %v1584_v33, %v1111_v32  ;;  %v1117_v47 = vshll.u32 %v1585_v35, %v1111_v32  ;;  %v1120_v48 = vshll.u32 %v1586_v40, %v1111_v32 }
 0x34b   : > { %v1123_v49 = vshll.u32 %v1587_v42, %v1111_v32  ;;  %v1126_v50 = vshll.u32 %v1588_v44, %v1111_v32  ;;  %vm1129_vm4 = vcmp.lt.s32.totalorder %v1110_v41, 1  ;;  %vm1131_vm5 = vcmp.lt.s32.totalorder %v1110_v41, 3 }
 0x34c   : > { %v1115_v51 = vshrl.u32 %v1585_v35, %v1112_v30  ;;  %v1118_v53 = vshrl.u32 %v1586_v40, %v1112_v30  ;;  %v1121_v54 = vshrl.u32 %v1587_v42, %v1112_v30  ;;  %v1113_v11 = vshrl.u32 %v1584_v33, %v1112_v30 }
 0x34d   : > { %v1124_v55 = vshrl.u32 %v1588_v44, %v1112_v30  ;;  %v1127_v56 = vshrl.u32 %v1589_v52, %v1112_v30  ;;  %vm1132_vm6 = vcmp.lt.s32.totalorder %v1110_v41, 4  ;;  %v1214_v63 = vand.u32 31, %v1212_v60 }
 0x34e   : > { %v1116_v57 = vor.u32 %v1115_v51, %v1114_v45  ;;  %v1119_v58 = vor.u32 %v1118_v53, %v1117_v47  ;;  %v1122_v59 = vor.u32 %v1121_v54, %v1120_v48  ;;  %vm1130_vm7 = vcmp.lt.s32.totalorder %v1110_v41, 2 }
 0x34f   : > { %v1125_v61 = vor.u32 %v1124_v55, %v1123_v49  ;;  %v1128_v62 = vor.u32 %v1127_v56, %v1126_v50  ;;  %v1215_v6 = vsub.s32 32, %v1214_v63  ;;  %v1213_v15 = vshrl.u32 %v1212_v60, 5 }
 0x350   : > { %v1133_v0 = vsel %vm1129_vm4, %v1113_v11, %v1116_v57  ;;  %v1134_v31 = vsel %vm1132_vm6, %v1122_v59, 2102212464  ;;  %v1137_v1 = vsel %vm1129_vm4, %v1116_v57, %v1119_v58  ;;  %v1141_v2 = vsel %vm1129_vm4, %v1119_v58, %v1122_v59 }
 0x351   : > { %v1135_v4 = vsel %vm1131_vm5, %v1119_v58, %v1134_v31  ;;  %v1138_v16 = vsel %vm1132_vm6, %v1125_v61, 920167782  ;;  %v1142_v5 = vsel %vm1132_vm6, %v1128_v62, 1326507024  ;;  %v1217_v25 = vshll.u32 %v1584_v33, %v1214_v63 }
 0x352   : > { %v1139_v3 = vsel %vm1131_vm5, %v1122_v59, %v1138_v16  ;;  %v1143_v7 = vsel %vm1131_vm5, %v1125_v61, %v1142_v5  ;;  %v1136_v12 = vsel %vm1130_vm7, %v1133_v0, %v1135_v4  ;;  %v1218_v28 = vshrl.u32 %v1585_v35, %v1215_v6 }
 0x353   : > { %v1140_v13 = vsel %vm1130_vm7, %v1137_v1, %v1139_v3  ;;  %v1144_v14 = vsel %vm1130_vm7, %v1141_v2, %v1143_v7  ;;  %v1220_v34 = vshll.u32 %v1585_v35, %v1214_v63  ;;  %v1221_v36 = vshrl.u32 %v1586_v40, %v1215_v6 }
 0x354   : > { %v1934_v17 = vmul.u32.u64.low %v1913_v43, %v1144_v14  ;;  %v1935_v21 = vmul.u32.u64.high %v1913_v43, %v1144_v14, %v1934_v17  ;;  %v1938_v22 = vmul.u32.u64.low %v1913_v43, %v1140_v13  ;;  %v1939_v23 = vmul.u32.u64.high %v1913_v43, %v1140_v13, %v1938_v22 }
 0x355   : > { %v1223_v37 = vshll.u32 %v1586_v40, %v1214_v63  ;;  %v1224_v19 = vshrl.u32 %v1587_v42, %v1215_v6  ;;  %v1226_v20 = vshll.u32 %v1587_v42, %v1214_v63  ;;  %v1227_v8 = vshrl.u32 %v1588_v44, %v1215_v6 }
 0x356   : > { %v1219_v18 = vor.u32 %v1218_v28, %v1217_v25  ;;  %v1222_v26 = vor.u32 %v1221_v36, %v1220_v34  ;;  %v1229_v39 = vshll.u32 %v1588_v44, %v1214_v63  ;;  %v1230_v29 = vshrl.u32 %v1589_v52, %v1215_v6 }
 0x357   : > { %v1152_v41 = vmul.u32 %v1913_v43, %v1136_v12  ;;  %vm1154_vm8 = vc.u32 %v1935_v21, %v1938_v22  ;;  %v1155_v35 = vadd.s32 1, %v1939_v23  ;;  %v1225_v40 = vor.u32 %v1224_v19, %v1223_v37 }
 0x358   : > { %v1216_v32 = vshrl.u32 %v1584_v33, %v1215_v6  ;;  %v1228_v30 = vor.u32 %v1227_v8, %v1226_v20  ;;  %v1231_v42 = vor.u32 %v1230_v29, %v1229_v39  ;;  %vm1232_vm9 = vcmp.lt.s32.totalorder %v1213_v15, 1 }
 0x359   : > { %v1156_v45 = vsel %vm1154_vm8, %v1155_v35, %v1939_v23  ;;  %vm1234_vm10 = vcmp.lt.s32.totalorder %v1213_v15, 3  ;;  %vm1235_vm11 = vcmp.lt.s32.totalorder %v1213_v15, 4  ;;  %v1240_v44 = vsel %vm1232_vm9, %v1219_v18, %v1222_v26 }
 0x35a   : > { %v1157_v46 = vadd.s32 %v1156_v45, %v1152_v41  ;;  %v1237_v52 = vsel %vm1235_vm11, %v1225_v40, 2102212464  ;;  %v1241_v47 = vsel %vm1235_vm11, %v1228_v30, 920167782  ;;  %v1244_v43 = vsel %vm1232_vm9, %v1222_v26, %v1225_v40 }
 0x35b   : > { %vm1233_vm12 = vcmp.lt.s32.totalorder %v1213_v15, 2  ;;  %v1236_v48 = vsel %vm1232_vm9, %v1216_v32, %v1219_v18  ;;  %v1242_v49 = vsel %vm1234_vm10, %v1225_v40, %v1241_v47  ;;  %v1245_v50 = vsel %vm1235_vm11, %v1231_v42, 1326507024 }
 0x35c   : > { %v1158_v51 = vadd.s32 536870912, %v1157_v46  ;;  %v1238_v53 = vsel %vm1234_vm10, %v1222_v26, %v1237_v52  ;;  %v1243_v54 = vsel %vm1233_vm12, %v1240_v44, %v1242_v49  ;;  %v1246_v33 = vsel %vm1234_vm10, %v1228_v30, %v1245_v50 }
 0x35d   : > { %v1247_v11 = vsel %vm1233_vm12, %v1244_v43, %v1246_v33  ;;  %v1958_v55 = vmul.u32.u64.low %v1248_v9, %v1243_v54  ;;  %v1959_v56 = vmul.u32.u64.high %v1248_v9, %v1243_v54, %v1958_v55  ;;  %v1239_v60 = vsel %vm1233_vm12, %v1236_v48, %v1238_v53 }
 0x35e   : > { %v1961_v57 = vshrl.u32 %v1158_v51, 30  ;;  %v1963_v58 = vmul.u32.u64.low %v1248_v9, %v1247_v11  ;;  %v1964_v59 = vmul.u32.u64.high %v1248_v9, %v1247_v11, %v1963_v58  ;;  %v1255_v0 = vmul.u32 %v1248_v9, %v1239_v60 }
 0x35f   : > { %v1258_v62 = vadd.s32 1, %v1959_v56  ;;  %v1153_v14 = vadd.s32 %v1938_v22, %v1935_v21  ;;  %vm1189_vm7 = vweird.f32 %v1901_v10  ;;  %vm1292_vm11 = vweird.f32 %v1905_v27 }
 0x360   : > { %v1160_v61 = vshll.u32 %v1961_v57, 30  ;;  %vm1257_vm13 = vc.u32 %v1964_v59, %v1958_v55  ;;  %v1256_v41 = vadd.s32 %v1958_v55, %v1964_v59  ;;  %v1183_v49 = vsub.s32 4, %v1961_v57 }
 0x361   : > { %v1259_v31 = vsel %vm1257_vm13, %v1258_v62, %v1959_v56 }
 0x362   : > { %v1161_v63 = vsub.s32 %v1157_v46, %v1160_v61  ;;  %v1260_v2 = vadd.s32 %v1259_v31, %v1255_v0  ;;  %v1184_v24 = vsel %vm1099_vm0, %v1183_v49, %v1961_v57 }
 0x363   : > { %v1186_v11 = vsel %vm1976_vm1, 0, %v1184_v24 }
 0x364   : > { %v1163_v1 = vsub.s32 0, %v1161_v63  ;;  %v1261_v16 = vadd.s32 536870912, %v1260_v2  ;;  %v1190_v58 = vand.u32 3, %v1186_v11 }
 0x366   : > { %v1424_v4 = vmin.u32 %v1163_v1, %v1161_v63  ;;  %v1262_v6 = vshrl.u32 %v1261_v16, 30  ;;  %vm1192_vm4 = vcmp.eq.s32.totalorder %v1190_v58, 0  ;;  %vm1195_vm5 = vcmp.eq.s32.totalorder %v1190_v58, 2 }
 0x367   : > { %vm1191_vm6 = vcmp.lt.s32.totalorder %v1190_v58, 2 }
 0x368   : > { %v1165_v5 = vclz %v1424_v4  ;;  %v1263_v7 = vshll.u32 %v1262_v6, 30  ;;  %v1286_v55 = vsub.s32 4, %v1262_v6 }
 0x36a   : > { %v1425_v3 = vadd.s32 4294967294, %v1165_v5  ;;  %v1264_v12 = vsub.s32 %v1260_v2, %v1263_v7  ;;  %v1287_v59 = vsel %vm1202_vm2, %v1286_v55, %v1262_v6 }
 0x36b   : > { %v1289_v61 = vsel %vm1988_vm3, 0, %v1287_v59 }
 0x36c   : > { %vm1426_vm14 = vcmp.lt.s32.totalorder %v1425_v3, 0  ;;  %v1266_v17 = vsub.s32 0, %v1264_v12  ;;  %v1293_v0 = vand.u32 3, %v1289_v61 }
 0x36d   : > { %v1168_v13 = vsel %vm1426_vm14, 0, %v1425_v3 }
 0x36e   : > { %v1169_v15 = vsub.s32 32, %v1168_v13  ;;  %v1173_v9 = vsub.s32 4294967266, %v1168_v13  ;;  %v1170_v23 = vshll.u32 %v1161_v63, %v1168_v13  ;;  %v1428_v34 = vmin.u32 %v1266_v17, %v1264_v12 }
 0x36f   : > { %vm1298_vm8 = vcmp.eq.s32.totalorder %v1293_v0, 2  ;;  %vm1295_vm9 = vcmp.eq.s32.totalorder %v1293_v0, 0  ;;  %vm1294_vm10 = vcmp.lt.s32.totalorder %v1293_v0, 2 }
 0x370   : > { %v1171_v25 = vshrl.u32 %v1153_v14, %v1169_v15  ;;  %v1174_v28 = vadd.s32 127, %v1173_v9  ;;  %v1268_v19 = vclz %v1428_v34 }
 0x372   : > { %v1172_v36 = vor.u32 %v1171_v25, %v1170_v23  ;;  %v1175_v37 = vshll.u32 %v1174_v28, 23  ;;  %v1429_v8 = vadd.s32 4294967294, %v1268_v19 }
 0x374   : > { %v1176_v20 = vor.u32 4788187, %v1175_v37  ;;  %v1179_v26 = vcvt.s32.f32 %v1172_v36  ;;  %vm1430_vm15 = vcmp.lt.s32.totalorder %v1429_v8, 0 }
 0x375   : > { %v1271_v39 = vsel %vm1430_vm15, 0, %v1429_v8 }
 0x376   : > { %v1177_v18 = vand.u32 2147483647, %v1176_v20  ;;  %v1272_v21 = vsub.s32 32, %v1271_v39  ;;  %v1276_v22 = vsub.s32 4294967266, %v1271_v39  ;;  %v1273_v40 = vshll.u32 %v1264_v12, %v1271_v39 }
 0x378   : > { %v1180_v29 = vmul.f32 %v1179_v26, %v1177_v18  ;;  %v1274_v32 = vshrl.u32 %v1256_v41, %v1272_v21  ;;  %v1277_v30 = vadd.s32 127, %v1276_v22 }
 0x37a   : > { %v1181_v35 = vxor.u32 2147483648, %v1180_v29  ;;  %v1275_v44 = vor.u32 %v1274_v32, %v1273_v40  ;;  %v1278_v46 = vshll.u32 %v1277_v30, 23 }
 0x37c   : > { %v1182_v45 = vsel %vm1099_vm0, %v1181_v35, %v1180_v29  ;;  %v1279_v47 = vor.u32 4788187, %v1278_v46  ;;  %v1282_v48 = vcvt.s32.f32 %v1275_v44 }
 0x37d   : > { %v1185_v52 = vsel %vm1976_vm1, %v1901_v10, %v1182_v45 }
 0x37e   : > { %1512 = vcosq.f32 %v1185_v52  ;;  %v1280_v43 = vand.u32 2147483647, %v1279_v47 }
 0x37f   : > { %1514 = vsinq.f32 %v1185_v52 }
 0x380   : > { %v1283_v50 = vmul.f32 %v1282_v48, %v1280_v43 }
 0x382   : > { %v1284_v51 = vxor.u32 2147483648, %v1283_v50 }
 0x384   : > { %v1285_v54 = vsel %vm1202_vm2, %v1284_v51, %v1283_v50 }
 0x385   : > { %v1288_v33 = vsel %vm1988_vm3, %v1905_v27, %v1285_v54 }
 0x386   : > { %1516 = vcosq.f32 %v1288_v33 }
 0x387   : > { %1518 = vsinq.f32 %v1288_v33 }
 0x38b   : > { %v1513_v56 = vpop.eup %1512 }
 0x38c   : > { %v1515_v57 = vpop.eup %1514  ;;  %v1196_v60 = vxor.u32 2147483648, %v1513_v56 }
 0x38d   : > { %v1193_v38 = vxor.u32 2147483648, %v1515_v57 }
 0x38e   : > { %v1197_v63 = vsel %vm1195_vm5, %v1196_v60, %v1515_v57 }
 0x38f   : > { %v1194_v62 = vsel %vm1192_vm4, %v1513_v56, %v1193_v38 }
 0x390   : > { %v1198_v31 = vsel %vm1191_vm6, %v1194_v62, %v1197_v63 }
 0x391   : > { %v1199_v16 = vsel %vm1189_vm7, nan, %v1198_v31 }
 0x392   : > { %v1303_v12 = vadd.f32 1.0, %v1199_v16 }
 0x393   : > { %v1517_v1 = vpop.eup %1516 }
 0x394   : > { %v1519_v2 = vpop.eup %1518  ;;  %v1299_v4 = vxor.u32 2147483648, %v1517_v1  ;;  %v1305_v10 = vmul.f32 0.5, %v1303_v12 }
 0x395   : > { %v1296_v5 = vxor.u32 2147483648, %v1519_v2 }
 0x396   : > { %v1300_v6 = vsel %vm1298_vm8, %v1299_v4, %v1519_v2 }
 0x397   : > { %v1297_v3 = vsel %vm1295_vm9, %v1517_v1, %v1296_v5 }
 0x398   : > { %v1301_v7 = vsel %vm1294_vm10, %v1297_v3, %v1300_v6 }
 0x399   : > { %v1302_v13 = vsel %vm1292_vm11, nan, %v1301_v7 }
 0x39a   : > { %v1304_v14 = vadd.f32 1.0, %v1302_v13 }
 0x39c   : > { %v1306_v15 = vmul.f32 0.5, %v1304_v14 }
 0x39e   : > { %v1309_v9 = vcombine.low %v1305_v10, %v1306_v15 }
 0x3a0   : > { %1311 = vst [vmem:[%s245_s16] sm:$0x77] %v1309_v9 }
 0x3a1   : > { %1533 = shalt.err (!%p1530_p3)
}
 0x3a2   : > { %s1534_s10 = scalar_lea.hbm %s1325_s20, 128  ;;  %s1538_s13 = scalar_lea.hbm %s2041_s6, 256 }
 0x3a3   : > { %p1535_p4 = scmp.ne.s32.totalorder %s1325_s20, %s1534_s10  ;;  %p1539_p9 = scmp.lt.s32.totalorder %s1325_s20, %s2041_s6 }
 0x3a4   : > { %p1540_p10 = scmp.lt.s32.totalorder %s1538_s13, %s1534_s10 }
 0x3a5   : > { %p1536_p7 = pnand %p1535_p4, %p1665_p5 }
 0x3a6   : > { %p1541_p11 = por %p1540_p10, %p1539_p9 }
 0x3a7   : > { %p1537_p8 = pneg %p1536_p7 }
 0x3a9   : > { %p1542_p12 = pnand %p1541_p11, %p1537_p8 }
 0x3ab   : > { %1545 = shalt.err (!%p1542_p12)
}
 0x3ac   : > { %1453 = dma.vmem_to_hbm [thread:$0]  (%p1665_p5), %s1328_s17, 128, %s1325_s20, %s1313_s26  }
 0x3ad PF: > { %p1459_p13 = scmp.ge.s32.totalorder %s1580_s24, 2  ;;  %s1339_s16 = sand.u32 1, %s1568_s21  }
 0x3ae   : > { %s1340_s18 = scalar_lea.sflag [#allocation4], %s1339_s16 }
 0x3af   : > { %p1456_p0 = pnand %p1459_p13, %p1669_p6 }
 0x3b1   : > { %p1457_p1 = pneg %p1456_p0 }
 0x3b3   : > { %1563 = dma.done.wait (%p1457_p1), %s1340_s18, 128  }
 0x3b4   : > { %1565 = vsyncadd (%p1457_p1), %s1340_s18, 4294967168  ;;  %p16_p2 = scmp.ge.s32.totalorder %s1652_s27, 4   ;;  %s2050_s21 = smov %s1572_s22 }
 0x3b5   : > { %s2051_s22 = smov %s1576_s23  ;;  %s2052_s23 = smov %s1663_s30 }
 0x3b6   : > { %s2053_s24 = smov %s1652_s27  ;;  %18 = sbr.rel (!%p16_p2) target bundleno = 3 (0x3), region = 80 }
 0x3bb   :  { %1345 = vsyncpa [#allocation4], 1 }
 0x3bc   :  { %1347 = vsyncpa [#allocation4 + $0x1], 1 }

</bundles_post_ra>
